<compile_context>
chip_gen: v5e
topology: v5e:2x2
jax: 0.10.0
libtpu: 0.0.40
codegen_flags: <defaults>
</compile_context>

<pallas_src>
import jax
import jax.numpy as jnp
import numpy as np
from jax.experimental import pallas as pl
from jax.experimental.pallas import tpu as pltpu


def _round_up(n, m):
    return ((n + m - 1) // m) * m


def _pick_tile(n, target, step):
    """Largest tile <= target that is a multiple of `step` and divides n."""
    t = min(n, max(target, step))
    t -= t % step
    while t > step and n % t:
        t -= step
    return t


# ----------------------------------------------------------------------------
# Tiled linear kernel (used for the hoisted input projection and the decoder):
# one (tn, K) x (K, tv) MXU matmul per grid point, bias added in-kernel.
# ----------------------------------------------------------------------------
def linear_kernel(x_ref, w_ref, b_ref, o_ref):
    o_ref[...] = (jnp.dot(x_ref[...], w_ref[...],
                          preferred_element_type=jnp.float32)
                  + b_ref[...])


def tiled_linear(x_bf16, w_t_bf16, b_f32, *, tn_target=256, tv_target=512):
    """x_bf16: (N, K) bf16, w_t_bf16: (K, V) bf16, b_f32: (1, V) f32 -> (N, V) f32."""
    # TODO(synk): on v7x (64 MiB VMEM) halve tv_target for large vocabularies
    # and raise vmem_limit_bytes; at these demo shapes everything is tiny.
    N, K = x_bf16.shape
    Kw, V = w_t_bf16.shape
    assert K == Kw
    tn = _pick_tile(N, tn_target, 8)
    tv = _pick_tile(V, tv_target, 128)
    assert N % tn == 0 and V % tv == 0, (N, tn, V, tv)
    return pl.pallas_call(
        linear_kernel,
        out_shape=jax.ShapeDtypeStruct((N, V), jnp.float32),
        grid_spec=pltpu.PrefetchScalarGridSpec(
            num_scalar_prefetch=0,
            grid=(N // tn, V // tv),
            in_specs=[
                pl.BlockSpec((tn, K), lambda i, j: (i, 0)),
                pl.BlockSpec((K, tv), lambda i, j: (0, j)),
                pl.BlockSpec((1, tv), lambda i, j: (0, j)),
            ],
            out_specs=pl.BlockSpec((tn, tv), lambda i, j: (i, j)),
        ),
        compiler_params=pltpu.CompilerParams(
            dimension_semantics=("parallel", "parallel")),
    )(x_bf16, w_t_bf16, b_f32)


# ----------------------------------------------------------------------------
# LSTM recurrence kernel: single pallas_call per layer (no time grid).  The
# precomputed gate pre-activations x_proj (with bias folded in), W_hh^T and
# the h/c state all live in VMEM; timesteps run in an in-kernel fori_loop.
# ----------------------------------------------------------------------------
def lstm_recurrence_kernel(xp_ref, whh_ref, h0_ref, c0_ref,
                           y_ref, hn_ref, cn_ref):
    S = xp_ref.shape[0]
    H = hn_ref.shape[-1]

    # Initialize the running state (one-time copy, not per timestep).
    hn_ref[...] = h0_ref[...]
    cn_ref[...] = c0_ref[...]

    def step(t, carry):
        h = hn_ref[...]
        c = cn_ref[...]
        # gates = x_proj[t] + h @ W_hh^T   (bf16 MXU operands, f32 accumulation)
        gates = xp_ref[t] + jnp.dot(h.astype(jnp.bfloat16), whh_ref[...],
                                    preferred_element_type=jnp.float32)
        # PyTorch gate order: i, f, g, o.  H is a multiple of 128 so the gate
        # slices are lane-aligned (no XLU relayouts inside the serial loop).
        i_g = jax.nn.sigmoid(gates[:, 0 * H:1 * H])
        f_g = jax.nn.sigmoid(gates[:, 1 * H:2 * H])
        g_g = jnp.tanh(gates[:, 2 * H:3 * H])
        o_g = jax.nn.sigmoid(gates[:, 3 * H:4 * H])
        c_new = f_g * c + i_g * g_g
        h_new = o_g * jnp.tanh(c_new)
        cn_ref[...] = c_new
        hn_ref[...] = h_new
        y_ref[t] = h_new
        return carry

    jax.lax.fori_loop(0, S, step, 0)


def lstm_recurrence(x_proj, whh_t_bf16, h0, c0):
    """x_proj: (S, B, 4H) f32, whh_t: (H, 4H) bf16, h0/c0: (B, H) f32."""
    S, B, G = x_proj.shape
    H = h0.shape[-1]
    assert G == 4 * H
    return pl.pallas_call(
        lstm_recurrence_kernel,
        out_shape=(jax.ShapeDtypeStruct((S, B, H), jnp.float32),   # all h_t
                   jax.ShapeDtypeStruct((B, H), jnp.float32),      # h_final
                   jax.ShapeDtypeStruct((B, H), jnp.float32)),     # c_final
    )(x_proj, whh_t_bf16, h0, c0)


# ----------------------------------------------------------------------------
# Parameters
# ----------------------------------------------------------------------------
def make_params(key, ntoken, ninp, nhid, nlayers):
    """Raw fp32 parameters in the PyTorch layout (used by the reference)."""
    ks = jax.random.split(key, 2 + 4 * nlayers)
    initrange = 0.1
    stdv = 1.0 / np.sqrt(nhid)
    params = {
        "encoder_w": jax.random.uniform(ks[0], (ntoken, ninp), jnp.float32,
                                        -initrange, initrange),
        "decoder_w": jax.random.uniform(ks[1], (ntoken, nhid), jnp.float32,
                                        -initrange, initrange),
        "decoder_b": jnp.zeros((ntoken,), jnp.float32),
        "lstm": [],
    }
    for l in range(nlayers):
        in_dim = ninp if l == 0 else nhid
        kk = ks[2 + 4 * l: 2 + 4 * (l + 1)]
        params["lstm"].append({
            "w_ih": jax.random.uniform(kk[0], (4 * nhid, in_dim), jnp.float32,
                                       -stdv, stdv),
            "w_hh": jax.random.uniform(kk[1], (4 * nhid, nhid), jnp.float32,
                                       -stdv, stdv),
            "b_ih": jax.random.uniform(kk[2], (4 * nhid,), jnp.float32,
                                       -stdv, stdv),
            "b_hh": jax.random.uniform(kk[3], (4 * nhid,), jnp.float32,
                                       -stdv, stdv),
        })
    return params


def prepare_params(raw):
    """Pre-transpose / pre-fold / pre-cast weights ONCE (not per forward call)."""
    prepped = {
        "encoder_w": raw["encoder_w"],                                  # f32 for gather
        "decoder_w_t": raw["decoder_w"].T.astype(jnp.bfloat16),         # (H, V) bf16
        "decoder_b": raw["decoder_b"][None, :].astype(jnp.float32),     # (1, V) f32
        "lstm": [],
    }
    for lp in raw["lstm"]:
        prepped["lstm"].append({
            "w_ih_t": lp["w_ih"].T.astype(jnp.bfloat16),                # (I, 4H) bf16
            "w_hh_t": lp["w_hh"].T.astype(jnp.bfloat16),                # (H, 4H) bf16
            "b": (lp["b_ih"] + lp["b_hh"])[None, :].astype(jnp.float32) # (1, 4H) f32
        })
    return prepped


# ----------------------------------------------------------------------------
# Full model forward
# ----------------------------------------------------------------------------
def rnn_model_forward(params, tokens, hidden):
    """tokens: (seq, batch) int32; hidden: (h, c) each (nlayers, batch, nhid)."""
    h0, c0 = hidden
    S, B = tokens.shape
    nlayers, _, H = h0.shape
    ninp = params["encoder_w"].shape[1]
    V = params["decoder_w_t"].shape[1]
    assert H % 128 == 0 and ninp % 128 == 0 and V % 128 == 0, (
        "Pallas path assumes lane-aligned (multiple-of-128) feature dims; "
        "pad ninp / nhid / ntoken if needed.")

    # Pad batch to a sublane multiple (8); padded rows compute throw-away
    # values and are sliced off at the end.
    Bp = _round_up(max(B, 1), 8)
    if Bp != B:
        tokens = jnp.pad(tokens, ((0, 0), (0, Bp - B)))
        h0 = jnp.pad(h0, ((0, 0), (0, Bp - B), (0, 0)))
        c0 = jnp.pad(c0, ((0, 0), (0, Bp - B), (0, 0)))

    # Embedding gather (JAX glue) + dropout (identity in eval mode).
    # TODO(synk): training-mode dropout would use pltpu.prng_random_bits.
    x = jnp.take(params["encoder_w"], tokens, axis=0)       # (S, Bp, ninp) f32

    h_finals, c_finals = [], []
    for lp in params["lstm"]:
        I = x.shape[-1]
        # Hoisted, time-independent input projection (+ folded bias) as one
        # big tiled MXU matmul over all timesteps.
        x_proj = tiled_linear(x.reshape(S * Bp, I).astype(jnp.bfloat16),
                              lp["w_ih_t"], lp["b"])
        x_proj = x_proj.reshape(S, Bp, 4 * H)
        # Serial recurrence with VMEM-resident state and weights.
        x, h_n, c_n = lstm_recurrence(x_proj, lp["w_hh_t"], h0_l := None or h0[0], c0[0]) \
            if False else lstm_recurrence(x_proj, lp["w_hh_t"],
                                          h0[len(h_finals)], c0[len(c_finals)])
        h_finals.append(h_n)
        c_finals.append(c_n)

    # Decoder projection over the flattened (seq*batch) rows.
    logits = tiled_linear(x.reshape(S * Bp, H).astype(jnp.bfloat16),
                          params["decoder_w_t"], params["decoder_b"])
    logits = logits.reshape(S, Bp, V)[:, :B]
    h_n = jnp.stack(h_finals)[:, :B]
    c_n = jnp.stack(c_finals)[:, :B]
    return logits, (h_n, c_n)


# ----------------------------------------------------------------------------
# Pure-JAX fp32 reference for a sanity check
# ----------------------------------------------------------------------------
def ref_forward(raw, tokens, hidden):
    h0, c0 = hidden
    emb = jnp.take(raw["encoder_w"], tokens, axis=0)
    x = emb
    hs, cs = [], []
    for l, lp in enumerate(raw["lstm"]):
        H = lp["w_hh"].shape[1]

        def step(carry, xt, lp=lp, H=H):
            h, c = carry
            gates = xt @ lp["w_ih"].T + lp["b_ih"] + h @ lp["w_hh"].T + lp["b_hh"]
            i = jax.nn.sigmoid(gates[:, 0 * H:1 * H])
            f = jax.nn.sigmoid(gates[:, 1 * H:2 * H])
            g = jnp.tanh(gates[:, 2 * H:3 * H])
            o = jax.nn.sigmoid(gates[:, 3 * H:4 * H])
            c_new = f * c + i * g
            h_new = o * jnp.tanh(c_new)
            return (h_new, c_new), h_new

        (h_f, c_f), ys = jax.lax.scan(step, (h0[l], c0[l]), x)
        hs.append(h_f)
        cs.append(c_f)
        x = ys
    logits = x @ raw["decoder_w"].T + raw["decoder_b"]
    return logits, (jnp.stack(hs), jnp.stack(cs))


if __name__ == "__main__":
    # Small, TPU-friendly shapes (nhid / ninp multiples of 128, vocab mult. of 128).
    ntoken, ninp, nhid, nlayers = 256, 128, 128, 2
    seq, batch = 8, 2

    key = jax.random.PRNGKey(0)
    kp, kt = jax.random.split(key)
    raw_params = make_params(kp, ntoken, ninp, nhid, nlayers)
    params = prepare_params(raw_params)
    tokens = jax.random.randint(kt, (seq, batch), 0, ntoken, dtype=jnp.int32)

    # init_hidden(bsz) equivalent for LSTM
    hidden = (jnp.zeros((nlayers, batch, nhid), jnp.float32),
              jnp.zeros((nlayers, batch, nhid), jnp.float32))

    logits, (h_n, c_n) = rnn_model_forward(params, tokens, hidden)
    jax.block_until_ready(logits)
    jax.block_until_ready(h_n)
    jax.block_until_ready(c_n)

    ref_logits, (ref_h, ref_c) = ref_forward(raw_params, tokens, hidden)
    # bf16 matmul operands -> loosened tolerance vs. the fp32 reference.
    np.testing.assert_allclose(np.asarray(logits), np.asarray(ref_logits),
                               rtol=5e-2, atol=5e-2)
    np.testing.assert_allclose(np.asarray(h_n), np.asarray(ref_h),
                               rtol=5e-2, atol=5e-2)
    np.testing.assert_allclose(np.asarray(c_n), np.asarray(ref_c),
                               rtol=5e-2, atol=5e-2)

    assert logits.shape == (seq, batch, ntoken)
    assert h_n.shape == (nlayers, batch, nhid)
    assert c_n.shape == (nlayers, batch, nhid)
    print("KERNEL_OK")
</pallas_src>

<mosaic_0001>
module attributes {stable_mosaic.version = 11 : i64} {
  func.func @linear_kernel(%arg0: i32, %arg1: i32, %arg2: memref<64x128xbf16, #tpu.memory_space<vmem>>, %arg3: memref<128x512xbf16, #tpu.memory_space<vmem>>, %arg4: memref<1x512xf32, #tpu.memory_space<vmem>>, %arg5: memref<64x512xf32, #tpu.memory_space<vmem>>) attributes {dimension_semantics = [#tpu.dimension_semantics<parallel>, #tpu.dimension_semantics<parallel>], iteration_bounds = array<i64: 1, 1>, scalar_prefetch = 0 : i64, scratch_operands = 0 : i64, tpu.core_type = #tpu.core_type<tc>, window_params = [{transform_indices = @transform_0, window_bounds = array<i64: 64, 128>}, {transform_indices = @transform_1, window_bounds = array<i64: 128, 512>}, {transform_indices = @transform_2, window_bounds = array<i64: 1, 512>}, {transform_indices = @transform_3, window_bounds = array<i64: 64, 512>}]} {
    %c0 = arith.constant 0 : index
    %c0_0 = arith.constant 0 : index
    %0 = vector.load %arg2[%c0, %c0_0] : memref<64x128xbf16, #tpu.memory_space<vmem>>, vector<64x128xbf16>
    %c0_1 = arith.constant 0 : index
    %c0_2 = arith.constant 0 : index
    %1 = vector.load %arg3[%c0_1, %c0_2] : memref<128x512xbf16, #tpu.memory_space<vmem>>, vector<128x512xbf16>
    %cst = arith.constant dense<0.000000e+00> : vector<64x512xf32>
    %2 = tpu.matmul %0, %1, %cst {dimension_numbers = #tpu.dot_dimension_numbers<[1], [0], [0], [1], [0, 0, 1, 1], [], []>} : vector<64x128xbf16>, vector<128x512xbf16>, vector<64x512xf32> -> vector<64x512xf32>
    %c0_3 = arith.constant 0 : index
    %c0_4 = arith.constant 0 : index
    %3 = vector.load %arg4[%c0_3, %c0_4] : memref<1x512xf32, #tpu.memory_space<vmem>>, vector<1x512xf32>
    %4 = vector.broadcast %3 : vector<1x512xf32> to vector<64x512xf32>
    %5 = arith.addf %2, %4 : vector<64x512xf32>
    %c0_5 = arith.constant 0 : index
    %c0_6 = arith.constant 0 : index
    %6 = vector.load %arg5[%c0_5, %c0_6] : memref<64x512xf32, #tpu.memory_space<vmem>>, vector<64x512xf32>
    tpu.vector_store %arg5[%c0_5, %c0_6], %5 {strides = array<i32>} : memref<64x512xf32, #tpu.memory_space<vmem>>, vector<64x512xf32>,
    return
  }
  func.func @transform_0(%arg0: i32, %arg1: i32) -> (i32, i32) {
    %c0_i32 = arith.constant 0 : i32
    %c0_i32_0 = arith.constant 0 : i32
    return %arg0, %c0_i32 : i32, i32
  }
  func.func @transform_1(%arg0: i32, %arg1: i32) -> (i32, i32) {
    %c0_i32 = arith.constant 0 : i32
    %c0_i32_0 = arith.constant 0 : i32
    return %c0_i32, %arg1 : i32, i32
  }
  func.func @transform_2(%arg0: i32, %arg1: i32) -> (i32, i32) {
    %c0_i32 = arith.constant 0 : i32
    %c0_i32_0 = arith.constant 0 : i32
    return %c0_i32, %arg1 : i32, i32
  }
  func.func @transform_3(%arg0: i32, %arg1: i32) -> (i32, i32) {
    %c0_i32 = arith.constant 0 : i32
    return %arg0, %arg1 : i32, i32
  }
}

</mosaic_0001>

<bundles_post_ra>
// kernel: tpu_custom_call.1
= control target key start
LH: loop header
LB: loop body
LE: loop exit
PB: predicated region body
PF: predicated region fallthrough
CT: control target
= control target key end

     0   :  { %8 = vsyncpa [#allocation3], 0  ;;  %s836_s0 = inlined_call_operand.hbm [shape: bf16[64,128], index: 0, kind: input, shape index: {}]   ;;  %s837_s1 = inlined_call_operand.hbm [shape: bf16[128,512], index: 1, kind: input, shape index: {}]   ;;  %s838_s2 = inlined_call_operand.hbm [shape: f32[1,512], index: 2, kind: input, shape index: {}]   ;;  %s839_s3 = inlined_call_operand.hbm [shape: f32[64,512], index: 3, kind: output, shape index: {}]  }
   0x1   :  { %9 = vsyncpa [#allocation6], 0  ;;  %s28_s14 = sshll.u32 %s837_s1, 4  ;;  %s29_s14 = int_to_ptr.hbm [resolvable:$true] %s28_s14 }
   0x2   :  { %10 = vsyncpa [#allocation4], 0  ;;  %s754_s15 = smov [#allocation5]   ;;  %s15_s19 = sshll.u32 %s836_s0, 4  ;;  %s16_s19 = int_to_ptr.hbm [resolvable:$true] %s15_s19 }
   0x3   :  { %s30_s16 = sshll.u32 %s754_s15, 4  ;;  %s755_s20 = smov 256   ;;  %s31_s16 = int_to_ptr.vmem [resolvable:$true] %s30_s16 }
   0x4   :  { %s756_s21 = smov 16   ;;  %s757_s22 = smov [#allocation2]  }
   0x5   :  { %36 = dma.hbm_to_vmem [thread:$0]  %s29_s14, 4096, %s31_s16, [#allocation6], %s755_s20, %s755_s20, %s756_s21  }
   0x6   :  { %s17_s23 = sshll.u32 %s757_s22, 4  ;;  %s758_s24 = smov 64   ;;  %s18_s23 = int_to_ptr.vmem [resolvable:$true] %s17_s23 }
   0x7   :  { %s759_s25 = smov 4   ;;  %s42_s27 = sshll.u32 %s838_s2, 4  ;;  %s43_s27 = int_to_ptr.hbm [resolvable:$true] %s42_s27 }
   0x8   :  { %23 = dma.hbm_to_vmem [thread:$0]  %s16_s19, 512, %s18_s23, [#allocation3], %s758_s24, %s758_s24, %s759_s25  }
   0x9   :  { %s760_s28 = smov [#allocation7]  }
   0xa   :  { %s44_s29 = sshll.u32 %s760_s28, 4  ;;  %s45_s29 = int_to_ptr.vmem [resolvable:$true] %s44_s29 }
   0xb   :  { %47 = dma.hbm_to_vmem [thread:$0]  %s43_s27, 64, %s45_s29, [#allocation6]  }
   0xc   :  { %748 = dma.done.wait [#allocation3], 512  }
   0xd   :  { %749 = vsyncadd [#allocation3], 4294966784 }
   0xe   :  { %750 = dma.done.wait [#allocation6], 4160  }
   0xf   :  { %751 = vsyncadd [#allocation6], 4294963136  ;;  %v592_v0 = vld [vmem:[#allocation5 + $0xe0] sm:$0xf]  ;;  %v640_v1 = vld [vmem:[#allocation5 + $0xec] sm:$0xf0] }
  0x10   :  { %v638_v2 = vld [vmem:[#allocation5 + $0xe4] sm:$0xf]  ;;  %v593_v3 = vor.u32 %v640_v1, %v592_v0  ;;  %v594_v4 = vld [vmem:[#allocation5 + $0xf0] sm:$0xf0]  ;;  %v600_v5 = vld [vmem:[#allocation5 + $0xe8] sm:$0xf] }
  0x11   :  { %v641_v6 = vld [vmem:[#allocation5 + $0xf4] sm:$0xf0]  ;;  %v597_v7 = vor.u32 %v638_v2, %v594_v4  ;;  %v639_v9 = vld [vmem:[#allocation5 + $0xec] sm:$0xf]  ;;  %v602_v10 = vld [vmem:[#allocation5 + $0xf8] sm:$0xf0] }
  0x12   :  { %v601_v8 = vor.u32 %v641_v6, %v600_v5  ;;  %v576_v11 = vld [vmem:[#allocation5 + $0xc0] sm:$0xf]  ;;  %294 = vmatpush.bf16.msra.mxu0 %v593_v3  ;;  %v605_v12 = vor.u32 %v639_v9, %v602_v10  ;;  %v636_v13 = vld [vmem:[#allocation5 + $0xcc] sm:$0xf0]  ;;  %v634_v14 = vld [vmem:[#allocation5 + $0xc4] sm:$0xf] }
  0x13   :  { %v578_v15 = vld [vmem:[#allocation5 + $0xd0] sm:$0xf0]  ;;  %323 = vmatpush.bf16.msra.mxu1 %v597_v7  ;;  %v577_v16 = vor.u32 %v636_v13, %v576_v11  ;;  %v584_v18 = vld [vmem:[#allocation5 + $0xc8] sm:$0xf]  ;;  %v637_v19 = vld [vmem:[#allocation5 + $0xd4] sm:$0xf0] }
  0x14   :  { %352 = vmatpush.bf16.msra.mxu2 %v601_v8  ;;  %v581_v17 = vor.u32 %v634_v14, %v578_v15  ;;  %v635_v20 = vld [vmem:[#allocation5 + $0xcc] sm:$0xf]  ;;  %381 = vmatpush.bf16.msra.mxu3 %v605_v12  ;;  %v585_v21 = vor.u32 %v637_v19, %v584_v18  ;;  %v586_v22 = vld [vmem:[#allocation5 + $0xd8] sm:$0xf0]  ;;  %v560_v23 = vld [vmem:[#allocation5 + $0xa0] sm:$0xf] }
  0x15   :  { %v632_v24 = vld [vmem:[#allocation5 + $0xac] sm:$0xf0]  ;;  %v589_v25 = vor.u32 %v635_v20, %v586_v22  ;;  %v630_v26 = vld [vmem:[#allocation5 + $0xa4] sm:$0xf]  ;;  %v562_v27 = vld [vmem:[#allocation5 + $0xb0] sm:$0xf0] }
  0x16   :  { %v568_v28 = vld [vmem:[#allocation5 + $0xa8] sm:$0xf]  ;;  %295 = vmatpush.bf16.msra.mxu0 %v577_v16  ;;  %v561_v29 = vor.u32 %v632_v24, %v560_v23  ;;  %v633_v30 = vld [vmem:[#allocation5 + $0xb4] sm:$0xf0]  ;;  %v631_v31 = vld [vmem:[#allocation5 + $0xac] sm:$0xf]  ;;  %v565_v33 = vor.u32 %v630_v26, %v562_v27 }
  0x17   :  { %v570_v32 = vld [vmem:[#allocation5 + $0xb8] sm:$0xf0]  ;;  %324 = vmatpush.bf16.msra.mxu1 %v581_v17  ;;  %v569_v34 = vor.u32 %v633_v30, %v568_v28  ;;  %v544_v35 = vld [vmem:[#allocation5 + $0x80] sm:$0xf]  ;;  %v628_v36 = vld [vmem:[#allocation5 + $0x8c] sm:$0xf0] }
  0x18   :  { %353 = vmatpush.bf16.msra.mxu2 %v585_v21  ;;  %v626_v37 = vld [vmem:[#allocation5 + $0x84] sm:$0xf]  ;;  %382 = vmatpush.bf16.msra.mxu3 %v589_v25  ;;  %v573_v38 = vor.u32 %v631_v31, %v570_v32  ;;  %v546_v39 = vld [vmem:[#allocation5 + $0x90] sm:$0xf0]  ;;  %v552_v40 = vld [vmem:[#allocation5 + $0x88] sm:$0xf]  ;;  %v545_v44 = vor.u32 %v628_v36, %v544_v35 }
  0x19   :  { %v629_v41 = vld [vmem:[#allocation5 + $0x94] sm:$0xf0]  ;;  %v627_v42 = vld [vmem:[#allocation5 + $0x8c] sm:$0xf]  ;;  %v554_v43 = vld [vmem:[#allocation5 + $0x98] sm:$0xf0]  ;;  %v549_v45 = vor.u32 %v626_v37, %v546_v39 }
  0x1a   :  { %296 = vmatpush.bf16.msra.mxu0 %v561_v29  ;;  %v553_v46 = vor.u32 %v629_v41, %v552_v40  ;;  %v528_v47 = vld [vmem:[#allocation5 + $0x60] sm:$0xf]  ;;  %v624_v48 = vld [vmem:[#allocation5 + $0x6c] sm:$0xf0]  ;;  %v622_v49 = vld [vmem:[#allocation5 + $0x64] sm:$0xf]  ;;  %v557_v50 = vor.u32 %v627_v42, %v554_v43 }
  0x1b   :  { %325 = vmatpush.bf16.msra.mxu1 %v565_v33  ;;  %v530_v51 = vld [vmem:[#allocation5 + $0x70] sm:$0xf0]  ;;  %v536_v52 = vld [vmem:[#allocation5 + $0x68] sm:$0xf]  ;;  %v625_v53 = vld [vmem:[#allocation5 + $0x74] sm:$0xf0]  ;;  %v529_v56 = vor.u32 %v624_v48, %v528_v47 }
  0x1c   :  { %354 = vmatpush.bf16.msra.mxu2 %v569_v34  ;;  %383 = vmatpush.bf16.msra.mxu3 %v573_v38  ;;  %v623_v54 = vld [vmem:[#allocation5 + $0x6c] sm:$0xf]  ;;  %v538_v55 = vld [vmem:[#allocation5 + $0x78] sm:$0xf0]  ;;  %v533_v57 = vor.u32 %v622_v49, %v530_v51  ;;  %v537_v58 = vor.u32 %v625_v53, %v536_v52  ;;  %v512_v59 = vld [vmem:[#allocation5 + $0x40] sm:$0xf] }
  0x1d   :  { %v620_v60 = vld [vmem:[#allocation5 + $0x4c] sm:$0xf0]  ;;  %v618_v61 = vld [vmem:[#allocation5 + $0x44] sm:$0xf]  ;;  %v541_v62 = vor.u32 %v623_v54, %v538_v55  ;;  %v514_v63 = vld [vmem:[#allocation5 + $0x50] sm:$0xf0] }
  0x1e   :  { %297 = vmatpush.bf16.msra.mxu0 %v545_v44  ;;  %v520_v0 = vld [vmem:[#allocation5 + $0x48] sm:$0xf]  ;;  %v621_v1 = vld [vmem:[#allocation5 + $0x54] sm:$0xf0]  ;;  %v619_v2 = vld [vmem:[#allocation5 + $0x4c] sm:$0xf]  ;;  %v513_v4 = vor.u32 %v620_v60, %v512_v59  ;;  %v517_v5 = vor.u32 %v618_v61, %v514_v63 }
  0x1f   :  { %326 = vmatpush.bf16.msra.mxu1 %v549_v45  ;;  %v522_v3 = vld [vmem:[#allocation5 + $0x58] sm:$0xf0]  ;;  %v521_v6 = vor.u32 %v621_v1, %v520_v0  ;;  %v496_v7 = vld [vmem:[#allocation5 + $0x20] sm:$0xf]  ;;  %v616_v8 = vld [vmem:[#allocation5 + $0x2c] sm:$0xf0] }
  0x20   :  { %355 = vmatpush.bf16.msra.mxu2 %v553_v46  ;;  %384 = vmatpush.bf16.msra.mxu3 %v557_v50  ;;  %v614_v9 = vld [vmem:[#allocation5 + $0x24] sm:$0xf]  ;;  %v525_v10 = vor.u32 %v619_v2, %v522_v3  ;;  %v498_v11 = vld [vmem:[#allocation5 + $0x30] sm:$0xf0]  ;;  %v504_v12 = vld [vmem:[#allocation5 + $0x28] sm:$0xf]  ;;  %v497_v16 = vor.u32 %v616_v8, %v496_v7 }
  0x21   :  { %v617_v13 = vld [vmem:[#allocation5 + $0x34] sm:$0xf0]  ;;  %v615_v14 = vld [vmem:[#allocation5 + $0x2c] sm:$0xf]  ;;  %v506_v15 = vld [vmem:[#allocation5 + $0x38] sm:$0xf0]  ;;  %v501_v17 = vor.u32 %v614_v9, %v498_v11 }
  0x22   :  { %298 = vmatpush.bf16.msra.mxu0 %v529_v56  ;;  %v505_v18 = vor.u32 %v617_v13, %v504_v12  ;;  %v480_v19 = vld [vmem:[#allocation5] sm:$0xf]  ;;  %v612_v20 = vld [vmem:[#allocation5 + $0xc] sm:$0xf0]  ;;  %v610_v21 = vld [vmem:[#allocation5 + $0x4] sm:$0xf]  ;;  %v509_v22 = vor.u32 %v615_v14, %v506_v15 }
  0x23   :  { %327 = vmatpush.bf16.msra.mxu1 %v533_v57  ;;  %v482_v23 = vld [vmem:[#allocation5 + $0x10] sm:$0xf0]  ;;  %v488_v24 = vld [vmem:[#allocation5 + $0x8] sm:$0xf]  ;;  %v613_v25 = vld [vmem:[#allocation5 + $0x14] sm:$0xf0]  ;;  %v481_v28 = vor.u32 %v612_v20, %v480_v19 }
  0x24   :  { %356 = vmatpush.bf16.msra.mxu2 %v537_v58  ;;  %385 = vmatpush.bf16.msra.mxu3 %v541_v62  ;;  %v611_v26 = vld [vmem:[#allocation5 + $0xc] sm:$0xf]  ;;  %v490_v27 = vld [vmem:[#allocation5 + $0x18] sm:$0xf0]  ;;  %v485_v29 = vor.u32 %v610_v21, %v482_v23  ;;  %v489_v30 = vor.u32 %v613_v25, %v488_v24  ;;  %v606_v32 = vld [vmem:[#allocation2] sm:$0xff]  ;;  %s761_s0 = smov [#allocation8]  }
  0x25   :  { %v493_v31 = vor.u32 %v611_v26, %v490_v27  ;;  %v607_v33 = vld [vmem:[#allocation2 + $0x8] sm:$0xff]  ;;  %v608_v34 = vld [vmem:[#allocation2 + $0x10] sm:$0xff]  ;;  %v609_v35 = vld [vmem:[#allocation2 + $0x18] sm:$0xff]  ;;  %s446_s2 = sshll.u32 %s761_s0, 4  ;;  %s448_s5 = sshll.u32 %s839_s3, 4  ;;  %s447_s2 = int_to_ptr.vmem [resolvable:$true] %s446_s2  ;;  %s449_s5 = int_to_ptr.hbm [resolvable:$true] %s448_s5 }
  0x26   :  { %299 = vmatpush.bf16.msra.mxu0 %v513_v4  ;;  %v100_v36 = vld [vmem:[#allocation7] sm:$0xf]  ;;  %s762_s6 = smov 512   ;;  %s763_s7 = smov 32  }
  0x27   :  { %328 = vmatpush.bf16.msra.mxu1 %v517_v5  ;;  %v793_v37 = vperm.slane %v100_v36, 0  ;;  %v795_v38 = vperm.slane %v100_v36, 1  ;;  %v799_v43 = vperm.slane %v100_v36, 2  ;;  %v801_v44 = vperm.slane %v100_v36, 3 }
  0x28   :  { %357 = vmatpush.bf16.msra.mxu2 %v521_v6  ;;  %386 = vmatpush.bf16.msra.mxu3 %v525_v10 }
  0x2a   :  { %300 = vmatpush.bf16.msra.mxu0 %v497_v16 }
  0x2b   :  { %329 = vmatpush.bf16.msra.mxu1 %v501_v17 }
  0x2c   :  { %358 = vmatpush.bf16.msra.mxu2 %v505_v18  ;;  %387 = vmatpush.bf16.msra.mxu3 %v509_v22 }
  0x2e   :  { %301 = vmatpush.bf16.msra.mxu0 %v481_v28 }
  0x2f   :  { %330 = vmatpush.bf16.msra.mxu1 %v485_v29 }
  0x30   :  { %359 = vmatpush.bf16.msra.mxu2 %v489_v30  ;;  %388 = vmatpush.bf16.msra.mxu3 %v493_v31 }
  0x31   :  { %302 = vmatmul.bf16.vlgmr.msra.gmra.mxu0 %v606_v32 }
  0x32   :  { %331 = vmatmul.bf16.vlgmr.msra.gmra.mxu1 %v606_v32 }
  0x33   :  { %360 = vmatmul.bf16.vlgmr.msra.gmra.mxu2 %v606_v32  ;;  %389 = vmatmul.bf16.vlgmr.msra.gmra.mxu3 %v606_v32 }
  0x41   :  { %307 = vmatmul.bf16.gmra.mxu0 %v607_v33 }
  0x42   :  { %336 = vmatmul.bf16.gmra.mxu1 %v607_v33 }
  0x43   :  { %365 = vmatmul.bf16.gmra.mxu2 %v607_v33  ;;  %394 = vmatmul.bf16.gmra.mxu3 %v607_v33 }
  0x51   :  { %312 = vmatmul.bf16.gmra.mxu0 %v608_v34 }
  0x52   :  { %341 = vmatmul.bf16.gmra.mxu1 %v608_v34 }
  0x53   :  { %370 = vmatmul.bf16.gmra.mxu2 %v608_v34  ;;  %399 = vmatmul.bf16.gmra.mxu3 %v608_v34 }
  0x61   :  { %317 = vmatmul.bf16.gmra.mxu0 %v609_v35 }
  0x62   :  { %346 = vmatmul.bf16.gmra.mxu1 %v609_v35 }
  0x63   :  { %375 = vmatmul.bf16.gmra.mxu2 %v609_v35  ;;  %404 = vmatmul.bf16.gmra.mxu3 %v609_v35 }
  0xae   :  { %v303_v39 = vpop.f32.mrf.mxu0 }
  0xaf   :  { %v304_v40 = vadd.f32 %v303_v39, %v793_v37  ;;  %v332_v41 = vpop.f32.mrf.mxu1 }
  0xb0   :  { %v333_v42 = vadd.f32 %v332_v41, %v795_v38 }
  0xb1   :  { %410 = vst [vmem:[#allocation8] sm:$0xff] %v304_v40 }
  0xb2   :  { %411 = vst [vmem:[#allocation8 + $0x8] sm:$0xff] %v333_v42 }
  0xb6   :  { %v361_v45 = vpop.f32.mrf.mxu2  ;;  %v390_v47 = vpop.f32.mrf.mxu3 }
  0xb7   :  { %v362_v46 = vadd.f32 %v361_v45, %v799_v43  ;;  %v305_v48 = vpop.f32.mrf.mxu0  ;;  %v391_v49 = vadd.f32 %v390_v47, %v801_v44  ;;  %v334_v51 = vpop.f32.mrf.mxu1 }
  0xb8   :  { %v306_v50 = vadd.f32 %v305_v48, %v793_v37  ;;  %v335_v52 = vadd.f32 %v334_v51, %v795_v38 }
  0xb9   :  { %412 = vst [vmem:[#allocation8 + $0x10] sm:$0xff] %v362_v46 }
  0xba   :  { %413 = vst [vmem:[#allocation8 + $0x18] sm:$0xff] %v391_v49 }
  0xbb   :  { %414 = vst [vmem:[#allocation8 + $0x20] sm:$0xff] %v306_v50 }
  0xbc   :  { %415 = vst [vmem:[#allocation8 + $0x28] sm:$0xff] %v335_v52 }
  0xbe   :  { %v363_v53 = vpop.f32.mrf.mxu2  ;;  %v392_v55 = vpop.f32.mrf.mxu3 }
  0xbf   :  { %v364_v54 = vadd.f32 %v363_v53, %v799_v43  ;;  %v308_v56 = vpop.f32.mrf.mxu0  ;;  %v393_v57 = vadd.f32 %v392_v55, %v801_v44  ;;  %v337_v59 = vpop.f32.mrf.mxu1 }
  0xc0   :  { %v309_v58 = vadd.f32 %v308_v56, %v793_v37  ;;  %v338_v60 = vadd.f32 %v337_v59, %v795_v38 }
  0xc1   :  { %416 = vst [vmem:[#allocation8 + $0x30] sm:$0xff] %v364_v54 }
  0xc2   :  { %417 = vst [vmem:[#allocation8 + $0x38] sm:$0xff] %v393_v57 }
  0xc3   :  { %418 = vst [vmem:[#allocation8 + $0x40] sm:$0xff] %v309_v58 }
  0xc4   :  { %419 = vst [vmem:[#allocation8 + $0x48] sm:$0xff] %v338_v60 }
  0xc6   :  { %v366_v61 = vpop.f32.mrf.mxu2  ;;  %v395_v63 = vpop.f32.mrf.mxu3 }
  0xc7   :  { %v367_v62 = vadd.f32 %v366_v61, %v799_v43  ;;  %v310_v0 = vpop.f32.mrf.mxu0  ;;  %v396_v1 = vadd.f32 %v395_v63, %v801_v44  ;;  %v339_v3 = vpop.f32.mrf.mxu1 }
  0xc8   :  { %v311_v2 = vadd.f32 %v310_v0, %v793_v37  ;;  %v340_v4 = vadd.f32 %v339_v3, %v795_v38 }
  0xc9   :  { %420 = vst [vmem:[#allocation8 + $0x50] sm:$0xff] %v367_v62 }
  0xca   :  { %421 = vst [vmem:[#allocation8 + $0x58] sm:$0xff] %v396_v1 }
  0xcb   :  { %422 = vst [vmem:[#allocation8 + $0x60] sm:$0xff] %v311_v2 }
  0xcc   :  { %423 = vst [vmem:[#allocation8 + $0x68] sm:$0xff] %v340_v4 }
  0xce   :  { %v368_v5 = vpop.f32.mrf.mxu2  ;;  %v397_v7 = vpop.f32.mrf.mxu3 }
  0xcf   :  { %v369_v6 = vadd.f32 %v368_v5, %v799_v43  ;;  %v313_v8 = vpop.f32.mrf.mxu0  ;;  %v398_v9 = vadd.f32 %v397_v7, %v801_v44  ;;  %v342_v11 = vpop.f32.mrf.mxu1 }
  0xd0   :  { %v314_v10 = vadd.f32 %v313_v8, %v793_v37  ;;  %v343_v12 = vadd.f32 %v342_v11, %v795_v38 }
  0xd1   :  { %424 = vst [vmem:[#allocation8 + $0x70] sm:$0xff] %v369_v6 }
  0xd2   :  { %425 = vst [vmem:[#allocation8 + $0x78] sm:$0xff] %v398_v9 }
  0xd3   :  { %426 = vst [vmem:[#allocation8 + $0x80] sm:$0xff] %v314_v10 }
  0xd4   :  { %427 = vst [vmem:[#allocation8 + $0x88] sm:$0xff] %v343_v12 }
  0xd6   :  { %v371_v13 = vpop.f32.mrf.mxu2  ;;  %v400_v15 = vpop.f32.mrf.mxu3 }
  0xd7   :  { %v372_v14 = vadd.f32 %v371_v13, %v799_v43  ;;  %v315_v16 = vpop.f32.mrf.mxu0  ;;  %v401_v17 = vadd.f32 %v400_v15, %v801_v44  ;;  %v344_v19 = vpop.f32.mrf.mxu1 }
  0xd8   :  { %v316_v18 = vadd.f32 %v315_v16, %v793_v37  ;;  %v345_v20 = vadd.f32 %v344_v19, %v795_v38 }
  0xd9   :  { %428 = vst [vmem:[#allocation8 + $0x90] sm:$0xff] %v372_v14 }
  0xda   :  { %429 = vst [vmem:[#allocation8 + $0x98] sm:$0xff] %v401_v17 }
  0xdb   :  { %430 = vst [vmem:[#allocation8 + $0xa0] sm:$0xff] %v316_v18 }
  0xdc   :  { %431 = vst [vmem:[#allocation8 + $0xa8] sm:$0xff] %v345_v20 }
  0xde   :  { %v373_v21 = vpop.f32.mrf.mxu2  ;;  %v402_v23 = vpop.f32.mrf.mxu3 }
  0xdf   :  { %v374_v22 = vadd.f32 %v373_v21, %v799_v43  ;;  %v318_v24 = vpop.f32.mrf.mxu0  ;;  %v403_v25 = vadd.f32 %v402_v23, %v801_v44  ;;  %v347_v27 = vpop.f32.mrf.mxu1 }
  0xe0   :  { %v319_v26 = vadd.f32 %v318_v24, %v793_v37  ;;  %v348_v28 = vadd.f32 %v347_v27, %v795_v38 }
  0xe1   :  { %432 = vst [vmem:[#allocation8 + $0xb0] sm:$0xff] %v374_v22 }
  0xe2   :  { %433 = vst [vmem:[#allocation8 + $0xb8] sm:$0xff] %v403_v25 }
  0xe3   :  { %434 = vst [vmem:[#allocation8 + $0xc0] sm:$0xff] %v319_v26 }
  0xe4   :  { %435 = vst [vmem:[#allocation8 + $0xc8] sm:$0xff] %v348_v28 }
  0xe6   :  { %v376_v29 = vpop.f32.mrf.mxu2  ;;  %v405_v31 = vpop.f32.mrf.mxu3 }
  0xe7   :  { %v377_v30 = vadd.f32 %v376_v29, %v799_v43  ;;  %v320_v32 = vpop.f32.mrf.mxu0  ;;  %v406_v33 = vadd.f32 %v405_v31, %v801_v44  ;;  %v349_v35 = vpop.f32.mrf.mxu1 }
  0xe8   :  { %v321_v34 = vadd.f32 %v320_v32, %v793_v37  ;;  %v350_v36 = vadd.f32 %v349_v35, %v795_v38 }
  0xe9   :  { %436 = vst [vmem:[#allocation8 + $0xd0] sm:$0xff] %v377_v30 }
  0xea   :  { %437 = vst [vmem:[#allocation8 + $0xd8] sm:$0xff] %v406_v33 }
  0xeb   :  { %438 = vst [vmem:[#allocation8 + $0xe0] sm:$0xff] %v321_v34 }
  0xec   :  { %439 = vst [vmem:[#allocation8 + $0xe8] sm:$0xff] %v350_v36 }
  0xee   :  { %v378_v39 = vpop.f32.mrf.mxu2  ;;  %v407_v41 = vpop.f32.mrf.mxu3 }
  0xef   :  { %v379_v40 = vadd.f32 %v378_v39, %v799_v43  ;;  %v408_v37 = vadd.f32 %v407_v41, %v801_v44 }
  0xf1   :  { %440 = vst [vmem:[#allocation8 + $0xf0] sm:$0xff] %v379_v40 }
  0xf2   :  { %441 = vst [vmem:[#allocation8 + $0xf8] sm:$0xff] %v408_v37 }
  0xf3   :  { %454 = dma.vmem_to_hbm [thread:$0]  %s447_s2, 4096, %s449_s5, [#allocation4], %s762_s6, %s762_s6, %s763_s7  }
  0xf4   :  { %752 = dma.done.wait [#allocation4], 4096  }
  0xf5   :  { %753 = vsyncadd [#allocation4], 4294963200 }
  0xf6   :  { %459 = vsyncpa [#allocation3], 1 }
  0xf7   :  { %460 = vsyncpa [#allocation6], 1 }
  0xf8   :  { %461 = vsyncpa [#allocation4], 1 }

</bundles_post_ra>
